<compile_context>
chip_gen: v7x
topology: tpu7x:2x2x1
jax: 0.10.0
libtpu: 0.0.40
codegen_flags: <defaults>
</compile_context>

<pallas_src>
import functools
import math

import jax
import jax.numpy as jnp
from jax.experimental import pallas as pl
from jax.experimental.pallas import tpu as pltpu


def _timestep_embedder_kernel(t_ref, freqs_ref, w1_ref, b1_ref, w2_ref, b2_ref,
                              o_ref):
    # t_ref    : (tb, 1)   f32          freqs_ref: (1, half) f32
    # w1_ref   : (F, H)    bf16/f32     b1_ref   : (1, H)    f32
    # w2_ref   : (H, H)    bf16/f32     b2_ref   : (1, H)    f32
    # o_ref    : (tb, H)
    half = freqs_ref.shape[-1]

    # Sinusoidal timestep embedding, f32 (VPU/EUP). No concat: the first
    # matmul is split over the cos / sin halves of W1 instead.
    args = t_ref[...] * freqs_ref[...]                                  # (tb, half)
    cos_e = jnp.cos(args)
    sin_e = jnp.sin(args)

    w_dtype = w1_ref.dtype
    h = jnp.dot(cos_e.astype(w_dtype), w1_ref[0:half, :],
                preferred_element_type=jnp.float32)
    h = h + jnp.dot(sin_e.astype(w_dtype), w1_ref[half:2 * half, :],
                    preferred_element_type=jnp.float32)
    h = h + b1_ref[...]

    # SiLU in f32; exp + approx reciprocal both go to the EUP slot.
    h = h * pl.reciprocal(1.0 + jnp.exp(-h), approx=True)

    out = jnp.dot(h.astype(w2_ref.dtype), w2_ref[...],
                  preferred_element_type=jnp.float32) + b2_ref[...]
    o_ref[...] = out.astype(o_ref.dtype)


def _grid_invariant_spec(shape):
    """Grid-invariant block, single-buffered when the JAX version supports it."""
    index_map = lambda i: (0,) * len(shape)
    if hasattr(pl, "Buffered"):
        try:
            return pl.BlockSpec(shape, index_map, pipeline_mode=pl.Buffered(1))
        except TypeError:
            # Older JAX: BlockSpec has no pipeline_mode kwarg.
            pass
    return pl.BlockSpec(shape, index_map)


def timestep_embedder_forward(t, w1_t, b1, w2_t, b2, *,
                              max_period=10000.0, tb=None, out_dtype=None):
    """TimestepEmbedder forward.

    t    : (B,) timesteps.
    w1_t : (F, H) == torch `mlp[0].weight.T` (stored pre-transposed)
    b1   : (H,)   == torch `mlp[0].bias`
    w2_t : (H, H) == torch `mlp[2].weight.T` (stored pre-transposed)
    b2   : (H,)   == torch `mlp[2].bias`
    out_dtype defaults to the weight dtype (bf16 weights -> bf16 output).
    """
    freq_dim, hidden = w1_t.shape
    assert freq_dim % 2 == 0, "odd frequency_embedding_size not supported"
    # TODO(synk): odd `frequency_embedding_size` would need the extra zero column.
    half = freq_dim // 2

    if out_dtype is None:
        out_dtype = w1_t.dtype          # prefer bf16 output (halves writeback)

    B = t.shape[0]
    t2d = t.astype(jnp.float32).reshape(B, 1)

    # Batch tile: sublane 16 for sub-32-bit outputs (bf16 native tile), else 8;
    # cap raised to 512 rows per block (still far below scoped VMEM).
    sub = 16 if jnp.dtype(out_dtype).itemsize < 4 else 8
    if tb is None:
        tb = min(-(-B // sub) * sub, 512)
    else:
        tb = -(-int(tb) // sub) * sub
    Bp = -(-B // tb) * tb               # pad batch to a multiple of tb
    if Bp != B:
        t2d = jnp.pad(t2d, ((0, Bp - B), (0, 0)))

    # Precompute frequency table once on the host side of the call.
    freqs = (1000.0 * jnp.exp(
        (-math.log(float(max_period)) / half)
        * jnp.arange(half, dtype=jnp.float32))).reshape(1, half)

    b1_2d = b1.astype(jnp.float32).reshape(1, hidden)
    b2_2d = b2.astype(jnp.float32).reshape(1, hidden)

    call = pl.pallas_call(
        _timestep_embedder_kernel,
        out_shape=jax.ShapeDtypeStruct((Bp, hidden), out_dtype),
        grid_spec=pltpu.PrefetchScalarGridSpec(
            num_scalar_prefetch=0,
            grid=(Bp // tb,),
            in_specs=[
                pl.BlockSpec((tb, 1), lambda i: (i, 0)),     # timesteps (tiled)
                _grid_invariant_spec((1, half)),             # freqs
                _grid_invariant_spec((freq_dim, hidden)),    # W1 (pre-transposed)
                _grid_invariant_spec((1, hidden)),           # b1
                _grid_invariant_spec((hidden, hidden)),      # W2 (pre-transposed)
                _grid_invariant_spec((1, hidden)),           # b2
            ],
            out_specs=pl.BlockSpec((tb, hidden), lambda i: (i, 0)),
        ),
        compiler_params=pltpu.CompilerParams(
            dimension_semantics=("parallel",)),
    )
    out = call(t2d, freqs, w1_t, b1_2d, w2_t, b2_2d)
    return out[:B]


def timestep_embedder_reference(t, w1_t, b1, w2_t, b2, *, max_period=10000.0):
    """Pure-JAX reference mirroring the kernel's dtype path."""
    half = w1_t.shape[0] // 2
    freqs = 1000.0 * jnp.exp(
        -math.log(max_period) * jnp.arange(half, dtype=jnp.float32) / half)
    args = t.astype(jnp.float32)[:, None] * freqs[None, :]
    emb = jnp.concatenate([jnp.cos(args), jnp.sin(args)], axis=-1)
    h = jnp.dot(emb.astype(w1_t.dtype), w1_t,
                preferred_element_type=jnp.float32) + b1.astype(jnp.float32)
    h = h * jax.nn.sigmoid(h)
    out = jnp.dot(h.astype(w2_t.dtype), w2_t,
                  preferred_element_type=jnp.float32) + b2.astype(jnp.float32)
    return out


if __name__ == "__main__":
    hidden_size = 512
    freq_dim = 256            # frequency_embedding_size (module default)
    batch = 8                 # number of timesteps

    key = jax.random.PRNGKey(0)
    kt, k1, kb1, k2, kb2 = jax.random.split(key, 5)

    # Diffusion-style timesteps in [0, 1).
    t = jax.random.uniform(kt, (batch,), dtype=jnp.float32)

    # Parameters stored pre-transposed in (in, out) layout (== torch weight.T),
    # bf16 weights for the MXU; biases kept f32.
    w1_t = (jax.random.normal(k1, (freq_dim, hidden_size), jnp.float32)
            * 0.02).astype(jnp.bfloat16)
    b1 = jax.random.normal(kb1, (hidden_size,), jnp.float32) * 0.02
    w2_t = (jax.random.normal(k2, (hidden_size, hidden_size), jnp.float32)
            * 0.02).astype(jnp.bfloat16)
    b2 = jax.random.normal(kb2, (hidden_size,), jnp.float32) * 0.02

    # Default path: bf16 output (matches weight dtype).
    y = timestep_embedder_forward(t, w1_t, b1, w2_t, b2)
    y = jax.block_until_ready(y)

    y_ref = timestep_embedder_reference(t, w1_t, b1, w2_t, b2)
    assert y.shape == (batch, hidden_size), y.shape
    err = float(jnp.max(jnp.abs(y.astype(jnp.float32) - y_ref)))
    assert jnp.allclose(y.astype(jnp.float32), y_ref, atol=2e-2, rtol=2e-2), (
        "mismatch vs reference, max abs err = " + str(err))

    # Also check the explicit f32-output path used when the consumer needs f32.
    y32 = timestep_embedder_forward(t, w1_t, b1, w2_t, b2, out_dtype=jnp.float32)
    y32 = jax.block_until_ready(y32)
    assert jnp.allclose(y32, y_ref, atol=2e-2, rtol=2e-2)

    print("KERNEL_OK")
</pallas_src>

<mosaic_0001>
module attributes {stable_mosaic.version = 11 : i64} {
  func.func @_timestep_embedder_kernel(%arg0: i32, %arg1: memref<16x1xf32, #tpu.memory_space<vmem>>, %arg2: memref<1x128xf32, #tpu.memory_space<vmem>>, %arg3: memref<256x512xbf16, #tpu.memory_space<vmem>>, %arg4: memref<1x512xf32, #tpu.memory_space<vmem>>, %arg5: memref<512x512xbf16, #tpu.memory_space<vmem>>, %arg6: memref<1x512xf32, #tpu.memory_space<vmem>>, %arg7: memref<16x512xbf16, #tpu.memory_space<vmem>>) attributes {dimension_semantics = [#tpu.dimension_semantics<parallel>], iteration_bounds = array<i64: 1>, scalar_prefetch = 0 : i64, scratch_operands = 0 : i64, tpu.core_type = #tpu.core_type<tc>, window_params = [{transform_indices = @transform_0, window_bounds = array<i64: 16, 1>}, {pipeline_mode = #tpu.pipeline_mode<synchronous>, transform_indices = @transform_1, window_bounds = array<i64: 1, 128>}, {pipeline_mode = #tpu.pipeline_mode<synchronous>, transform_indices = @transform_2, window_bounds = array<i64: 256, 512>}, {pipeline_mode = #tpu.pipeline_mode<synchronous>, transform_indices = @transform_3, window_bounds = array<i64: 1, 512>}, {pipeline_mode = #tpu.pipeline_mode<synchronous>, transform_indices = @transform_4, window_bounds = array<i64: 512, 512>}, {pipeline_mode = #tpu.pipeline_mode<synchronous>, transform_indices = @transform_5, window_bounds = array<i64: 1, 512>}, {transform_indices = @transform_6, window_bounds = array<i64: 16, 512>}]} {
    %c0 = arith.constant 0 : index
    %c0_0 = arith.constant 0 : index
    %0 = vector.load %arg1[%c0, %c0_0] : memref<16x1xf32, #tpu.memory_space<vmem>>, vector<16x1xf32>
    %c0_1 = arith.constant 0 : index
    %c0_2 = arith.constant 0 : index
    %1 = vector.load %arg2[%c0_1, %c0_2] : memref<1x128xf32, #tpu.memory_space<vmem>>, vector<1x128xf32>
    %2 = vector.broadcast %0 : vector<16x1xf32> to vector<16x128xf32>
    %3 = vector.broadcast %1 : vector<1x128xf32> to vector<16x128xf32>
    %4 = arith.mulf %2, %3 : vector<16x128xf32>
    %5 = math.cos %4 : vector<16x128xf32>
    %6 = math.sin %4 : vector<16x128xf32>
    %7 = arith.truncf %5 : vector<16x128xf32> to vector<16x128xbf16>
    %c0_3 = arith.constant 0 : index
    %c0_4 = arith.constant 0 : index
    %8 = vector.load %arg3[%c0_3, %c0_4] : memref<256x512xbf16, #tpu.memory_space<vmem>>, vector<128x512xbf16>
    %cst = arith.constant dense<0.000000e+00> : vector<16x512xf32>
    %9 = tpu.matmul %7, %8, %cst {dimension_numbers = #tpu.dot_dimension_numbers<[1], [0], [0], [1], [0, 0, 1, 1], [], []>} : vector<16x128xbf16>, vector<128x512xbf16>, vector<16x512xf32> -> vector<16x512xf32>
    %10 = arith.truncf %6 : vector<16x128xf32> to vector<16x128xbf16>
    %c128 = arith.constant 128 : index
    %c0_5 = arith.constant 0 : index
    %11 = vector.load %arg3[%c128, %c0_5] : memref<256x512xbf16, #tpu.memory_space<vmem>>, vector<128x512xbf16>
    %cst_6 = arith.constant dense<0.000000e+00> : vector<16x512xf32>
    %12 = tpu.matmul %10, %11, %cst_6 {dimension_numbers = #tpu.dot_dimension_numbers<[1], [0], [0], [1], [0, 0, 1, 1], [], []>} : vector<16x128xbf16>, vector<128x512xbf16>, vector<16x512xf32> -> vector<16x512xf32>
    %13 = arith.addf %9, %12 : vector<16x512xf32>
    %c0_7 = arith.constant 0 : index
    %c0_8 = arith.constant 0 : index
    %14 = vector.load %arg4[%c0_7, %c0_8] : memref<1x512xf32, #tpu.memory_space<vmem>>, vector<1x512xf32>
    %15 = vector.broadcast %14 : vector<1x512xf32> to vector<16x512xf32>
    %16 = arith.addf %13, %15 : vector<16x512xf32>
    %cst_9 = arith.constant 0.000000e+00 : f32
    %17 = vector.broadcast %cst_9 : f32 to vector<16x512xf32>
    %18 = arith.subf %17, %16 : vector<16x512xf32>
    %19 = math.exp %18 : vector<16x512xf32>
    %cst_10 = arith.constant 1.000000e+00 : f32
    %20 = vector.broadcast %cst_10 : f32 to vector<16x512xf32>
    %21 = arith.addf %20, %19 : vector<16x512xf32>
    %22 = tpu.reciprocal %21 {approx = true} : vector<16x512xf32> -> vector<16x512xf32>
    %23 = arith.mulf %16, %22 : vector<16x512xf32>
    %24 = arith.truncf %23 : vector<16x512xf32> to vector<16x512xbf16>
    %c0_11 = arith.constant 0 : index
    %c0_12 = arith.constant 0 : index
    %25 = vector.load %arg5[%c0_11, %c0_12] : memref<512x512xbf16, #tpu.memory_space<vmem>>, vector<512x512xbf16>
    %cst_13 = arith.constant dense<0.000000e+00> : vector<16x512xf32>
    %26 = tpu.matmul %24, %25, %cst_13 {dimension_numbers = #tpu.dot_dimension_numbers<[1], [0], [0], [1], [0, 0, 1, 1], [], []>} : vector<16x512xbf16>, vector<512x512xbf16>, vector<16x512xf32> -> vector<16x512xf32>
    %c0_14 = arith.constant 0 : index
    %c0_15 = arith.constant 0 : index
    %27 = vector.load %arg6[%c0_14, %c0_15] : memref<1x512xf32, #tpu.memory_space<vmem>>, vector<1x512xf32>
    %28 = vector.broadcast %27 : vector<1x512xf32> to vector<16x512xf32>
    %29 = arith.addf %26, %28 : vector<16x512xf32>
    %30 = arith.truncf %29 : vector<16x512xf32> to vector<16x512xbf16>
    %c0_16 = arith.constant 0 : index
    %c0_17 = arith.constant 0 : index
    %31 = vector.load %arg7[%c0_16, %c0_17] : memref<16x512xbf16, #tpu.memory_space<vmem>>, vector<16x512xbf16>
    tpu.vector_store %arg7[%c0_16, %c0_17], %30 {strides = array<i32>} : memref<16x512xbf16, #tpu.memory_space<vmem>>, vector<16x512xbf16>,
    return
  }
  func.func @transform_0(%arg0: i32) -> (i32, i32) {
    %c0_i32 = arith.constant 0 : i32
    %c0_i32_0 = arith.constant 0 : i32
    return %arg0, %c0_i32 : i32, i32
  }
  func.func @transform_1(%arg0: i32) -> (i32, i32) {
    %c0_i32 = arith.constant 0 : i32
    %c0_i32_0 = arith.constant 0 : i32
    %c0_i32_1 = arith.constant 0 : i32
    return %c0_i32, %c0_i32_0 : i32, i32
  }
  func.func @transform_2(%arg0: i32) -> (i32, i32) {
    %c0_i32 = arith.constant 0 : i32
    %c0_i32_0 = arith.constant 0 : i32
    %c0_i32_1 = arith.constant 0 : i32
    return %c0_i32, %c0_i32_0 : i32, i32
  }
  func.func @transform_3(%arg0: i32) -> (i32, i32) {
    %c0_i32 = arith.constant 0 : i32
    %c0_i32_0 = arith.constant 0 : i32
    %c0_i32_1 = arith.constant 0 : i32
    return %c0_i32, %c0_i32_0 : i32, i32
  }
  func.func @transform_4(%arg0: i32) -> (i32, i32) {
    %c0_i32 = arith.constant 0 : i32
    %c0_i32_0 = arith.constant 0 : i32
    %c0_i32_1 = arith.constant 0 : i32
    return %c0_i32, %c0_i32_0 : i32, i32
  }
  func.func @transform_5(%arg0: i32) -> (i32, i32) {
    %c0_i32 = arith.constant 0 : i32
    %c0_i32_0 = arith.constant 0 : i32
    %c0_i32_1 = arith.constant 0 : i32
    return %c0_i32, %c0_i32_0 : i32, i32
  }
  func.func @transform_6(%arg0: i32) -> (i32, i32) {
    %c0_i32 = arith.constant 0 : i32
    %c0_i32_0 = arith.constant 0 : i32
    return %arg0, %c0_i32 : i32, i32
  }
}

</mosaic_0001>

<bundles_post_ra>
// kernel: tpu_custom_call.1
= control target key start
LH: loop header
LB: loop body
LE: loop exit
PB: predicated region body
PF: predicated region fallthrough
CT: control target
= control target key end

     0   :  { %11 = vsyncpa [#allocation3], 0  ;;  %s3081_s0 = inlined_call_operand.vmem [shape: f32[16,1], index: 0, kind: input, shape index: {}]   ;;  %s3082_s1 = inlined_call_operand.vmem [shape: f32[1,128], index: 1, kind: input, shape index: {}]   ;;  %s3083_s2 = inlined_call_operand.hbm [shape: bf16[256,512], index: 2, kind: input, shape index: {}]   ;;  %s3084_s3 = inlined_call_operand.vmem [shape: f32[1,512], index: 3, kind: input, shape index: {}]   ;;  %s3085_s4 = inlined_call_operand.hbm [shape: bf16[512,512], index: 4, kind: input, shape index: {}]   ;;  %s3086_s5 = inlined_call_operand.vmem [shape: f32[1,512], index: 5, kind: input, shape index: {}]   ;;  %s3087_s6 = inlined_call_operand.hbm [shape: bf16[16,512], index: 6, kind: output, shape index: {}]  }
   0x1   :  { %12 = vsyncpa [#allocation6], 0 }
   0x2   :  { %13 = vsyncpa [#allocation4], 0  ;;  %s2798_s21 = smov [#allocation2]   ;;  %s2726_s25 = scalar_lea.hbm %s3083_s2, 8192 }
   0x3   :  { %s23_s22 = sshll.u32 %s2798_s21, 4  ;;  %p2727_p0 = scmp.ne.s32.totalorder %s3083_s2, %s2726_s25  ;;  %s24_s22 = int_to_ptr.vmem [resolvable:$true] %s23_s22 }
   0x4   :  { %p2730_p1 = scmp.lt.u32.totalorder %s2726_s25, %s3083_s2 }
   0x6   :  { %p2732_p2 = pnand %p2730_p1, %p2727_p0 }
   0x8   :  { %2735 = shalt.err (!%p2732_p2)
}
   0x9   :  { %s2736_s30 = scalar_lea.vmem %s24_s22, 8192  ;;  %p2741_p4 = scmp.lt.s32.totalorder %s24_s22, %s24_s22 }
   0xa   :  { %p2737_p3 = scmp.ne.s32.totalorder %s24_s22, %s2736_s30  ;;  %p2742_p5 = scmp.lt.s32.totalorder %s2736_s30, %s2736_s30 }
   0xc   :  { %p2743_p6 = por %p2742_p5, %p2741_p4 }
   0xe   :  { %p2744_p7 = pnand %p2743_p6, %p2737_p3 }
  0x10   :  { %2747 = shalt.err (!%p2744_p7)
}
  0x11   :  { %s2799_s7 = smov 256   ;;  %s2800_s8 = smov 16  }
  0x12   :  { %29 = dma.hbm_to_vmem [thread:$0]  %s3083_s2, 8192, %s24_s22, [#allocation3], %s2799_s7, %s2799_s7, %s2800_s8  }
  0x13   :  { %s2801_s11 = smov [#allocation5]   ;;  %s2748_s15 = scalar_lea.hbm %s3085_s4, 16384 }
  0x14   :  { %s37_s12 = sshll.u32 %s2801_s11, 4  ;;  %p2749_p8 = scmp.ne.s32.totalorder %s3085_s4, %s2748_s15  ;;  %s38_s12 = int_to_ptr.vmem [resolvable:$true] %s37_s12 }
  0x15   :  { %p2752_p9 = scmp.lt.u32.totalorder %s2748_s15, %s3085_s4 }
  0x17   :  { %p2754_p10 = pnand %p2752_p9, %p2749_p8 }
  0x19   :  { %2757 = shalt.err (!%p2754_p10)
}
  0x1a   :  { %s2758_s20 = scalar_lea.vmem %s38_s12, 16384  ;;  %p2763_p12 = scmp.lt.s32.totalorder %s38_s12, %s38_s12 }
  0x1b   :  { %p2759_p11 = scmp.ne.s32.totalorder %s38_s12, %s2758_s20  ;;  %p2764_p13 = scmp.lt.s32.totalorder %s2758_s20, %s2758_s20 }
  0x1d   :  { %p2765_p0 = por %p2764_p13, %p2763_p12 }
  0x1f   :  { %p2766_p1 = pnand %p2765_p0, %p2759_p11 }
  0x21   :  { %2769 = shalt.err (!%p2766_p1)
}
  0x22   :  { %43 = dma.hbm_to_vmem [thread:$0]  %s3085_s4, 16384, %s38_s12, [#allocation6], %s2799_s7, %s2799_s7, %s2800_s8  }
  0x23   :  { %2792 = dma.done.wait [#allocation3], 8192  }
  0x24   :  { %2793 = vsyncadd [#allocation3], 4294959104 }
  0x25   :  { %2794 = dma.done.wait [#allocation6], 16384  }
  0x26   :  { %2795 = vsyncadd [#allocation6], 4294950912  ;;  %v2802_v0 = vmov 0   ;;  %v53_v1 = vld [vmem:[%s3081_s0] sm:$0xff]  ;;  %v54_v2 = vld [vmem:[%s3081_s0 + $0x8] sm:$0xff] }
  0x27   :  { %2397 = vset.pattern.permute.xlu0 %v2802_v0  ;;  %746 = vmatprep.mubr.bf16.mxu0 %v2802_v0  ;;  %v2398_v3 = vld [vmem:[#allocation2 + $0x104] ss:$16 sps:$4 sm:$0xff]   ;;  %v2400_v4 = vld [vmem:[#allocation2 + $0x10c] ss:$16 sps:$4 sm:$0xff]   ;;  %v2402_v5 = vld [vmem:[#allocation2 + $0x100] ss:$16 sps:$4 sm:$0xff]  }
  0x28   :  { %789 = vmatprep.mubr.bf16.mxu1 %v2802_v0  ;;  %58 = vperm.xlu0 %2397, %v53_v1   ;;  %v2403_v6 = vld [vmem:[#allocation2 + $0x108] ss:$16 sps:$4 sm:$0xff]   ;;  %v2404_v7 = vld [vmem:[#allocation2 + $0x124] ss:$16 sps:$4 sm:$0xff]   ;;  %v2406_v8 = vld [vmem:[#allocation2 + $0x12c] ss:$16 sps:$4 sm:$0xff]  }
  0x29   :  { %714 = vmatprep.subr.bf16.mxu0 %v2398_v3  ;;  %757 = vmatprep.subr.bf16.mxu1 %v2400_v4  ;;  %v2408_v9 = vld [vmem:[#allocation2 + $0x120] ss:$16 sps:$4 sm:$0xff]   ;;  %v2409_v10 = vld [vmem:[#allocation2 + $0x128] ss:$16 sps:$4 sm:$0xff]   ;;  %v2410_v11 = vld [vmem:[#allocation2 + $0x144] ss:$16 sps:$4 sm:$0xff]  }
  0x2a   :  { %715 = vmatpush1.bf16.msra.mxu0 %v2402_v5  ;;  %758 = vmatpush1.bf16.msra.mxu1 %v2403_v6  ;;  %v2412_v12 = vld [vmem:[#allocation2 + $0x14c] ss:$16 sps:$4 sm:$0xff]   ;;  %v2414_v13 = vld [vmem:[#allocation2 + $0x140] ss:$16 sps:$4 sm:$0xff]   ;;  %v2415_v14 = vld [vmem:[#allocation2 + $0x148] ss:$16 sps:$4 sm:$0xff]  }
  0x2b   :  { %716 = vmatprep.subr.bf16.mxu0 %v2404_v7  ;;  %759 = vmatprep.subr.bf16.mxu1 %v2406_v8  ;;  %v2416_v15 = vld [vmem:[#allocation2 + $0x164] ss:$16 sps:$4 sm:$0xff]   ;;  %v2418_v16 = vld [vmem:[#allocation2 + $0x16c] ss:$16 sps:$4 sm:$0xff]   ;;  %v2420_v17 = vld [vmem:[#allocation2 + $0x160] ss:$16 sps:$4 sm:$0xff]  }
  0x2c   :  { %63 = vperm.xlu0 %2397, %v54_v2   ;;  %v2421_v18 = vld [vmem:[#allocation2 + $0x168] ss:$16 sps:$4 sm:$0xff]   ;;  %v2422_v19 = vld [vmem:[#allocation2 + $0x184] ss:$16 sps:$4 sm:$0xff]   ;;  %v2424_v20 = vld [vmem:[#allocation2 + $0x18c] ss:$16 sps:$4 sm:$0xff]  }
  0x2d   :  { %v2426_v21 = vld [vmem:[#allocation2 + $0x180] ss:$16 sps:$4 sm:$0xff]   ;;  %v2427_v22 = vld [vmem:[#allocation2 + $0x188] ss:$16 sps:$4 sm:$0xff]   ;;  %v2428_v23 = vld [vmem:[#allocation2 + $0x1a4] ss:$16 sps:$4 sm:$0xff]  }
  0x2e   :  { %717 = vmatpush1.bf16.msra.mxu0 %v2408_v9  ;;  %760 = vmatpush1.bf16.msra.mxu1 %v2409_v10  ;;  %v2430_v24 = vld [vmem:[#allocation2 + $0x1ac] ss:$16 sps:$4 sm:$0xff]   ;;  %v2432_v25 = vld [vmem:[#allocation2 + $0x1a0] ss:$16 sps:$4 sm:$0xff]   ;;  %v2433_v26 = vld [vmem:[#allocation2 + $0x1a8] ss:$16 sps:$4 sm:$0xff]  }
  0x2f   :  { %718 = vmatprep.subr.bf16.mxu0 %v2410_v11  ;;  %761 = vmatprep.subr.bf16.mxu1 %v2412_v12  ;;  %v2434_v27 = vld [vmem:[#allocation2 + $0x1c4] ss:$16 sps:$4 sm:$0xff]   ;;  %v2436_v28 = vld [vmem:[#allocation2 + $0x1cc] ss:$16 sps:$4 sm:$0xff]   ;;  %v2438_v29 = vld [vmem:[#allocation2 + $0x1c0] ss:$16 sps:$4 sm:$0xff]  }
  0x30   :  { %v2439_v30 = vld [vmem:[#allocation2 + $0x1c8] ss:$16 sps:$4 sm:$0xff]   ;;  %v2440_v31 = vld [vmem:[#allocation2 + $0x1e4] ss:$16 sps:$4 sm:$0xff]   ;;  %v2442_v32 = vld [vmem:[#allocation2 + $0x1ec] ss:$16 sps:$4 sm:$0xff]  }
  0x31   :  { %v2444_v33 = vld [vmem:[#allocation2 + $0x1e0] ss:$16 sps:$4 sm:$0xff]   ;;  %v2445_v34 = vld [vmem:[#allocation2 + $0x1e8] ss:$16 sps:$4 sm:$0xff]   ;;  %v2448_v35 = vld [vmem:[#allocation2 + $0x4] ss:$16 sps:$4 sm:$0xff]  }
  0x32   :  { %719 = vmatpush1.bf16.msra.mxu0 %v2414_v13  ;;  %762 = vmatpush1.bf16.msra.mxu1 %v2415_v14  ;;  %v2451_v36 = vld [vmem:[#allocation2 + $0xc] ss:$16 sps:$4 sm:$0xff]   ;;  %v2136_v37 = vld [vmem:[%s3082_s1] ss:$0 sm:$0xff]  ;;  %v2803_v58 = vmov 683565275  }
  0x33   :  { %720 = vmatprep.subr.bf16.mxu0 %v2416_v15  ;;  %763 = vmatprep.subr.bf16.mxu1 %v2418_v16  ;;  %v2804_v62 = vmov 2475754826   ;;  %v2805_v1 = vmov 2131351028   ;;  %v2806_v3 = vmov 2102212464  }
  0x34   :  { %v2807_v5 = vmov 920167782   ;;  %v2808_v12 = vmov 1326507024  }
  0x36   :  { %721 = vmatpush1.bf16.msra.mxu0 %v2420_v17  ;;  %764 = vmatpush1.bf16.msra.mxu1 %v2421_v18 }
  0x37   :  { %722 = vmatprep.subr.bf16.mxu0 %v2422_v19  ;;  %765 = vmatprep.subr.bf16.mxu1 %v2424_v20 }
  0x3a   :  { %723 = vmatpush1.bf16.msra.mxu0 %v2426_v21  ;;  %766 = vmatpush1.bf16.msra.mxu1 %v2427_v22 }
  0x3b   :  { %724 = vmatprep.subr.bf16.mxu0 %v2428_v23  ;;  %767 = vmatprep.subr.bf16.mxu1 %v2430_v24 }
  0x3e   :  { %725 = vmatpush1.bf16.msra.mxu0 %v2432_v25  ;;  %768 = vmatpush1.bf16.msra.mxu1 %v2433_v26 }
  0x3f   :  { %726 = vmatprep.subr.bf16.mxu0 %v2434_v27  ;;  %769 = vmatprep.subr.bf16.mxu1 %v2436_v28 }
  0x42   :  { %727 = vmatpush1.bf16.msra.mxu0 %v2438_v29  ;;  %770 = vmatpush1.bf16.msra.mxu1 %v2439_v30 }
  0x43   :  { %728 = vmatprep.subr.bf16.mxu0 %v2440_v31  ;;  %771 = vmatprep.subr.bf16.mxu1 %v2442_v32 }
  0x46   :  { %729 = vmatpush1.bf16.msra.mxu0 %v2444_v33  ;;  %772 = vmatpush1.bf16.msra.mxu1 %v2445_v34 }
  0x47   :  { %960 = vmatprep.subr.bf16.mxu0 %v2448_v35  ;;  %1003 = vmatprep.subr.bf16.mxu1 %v2451_v36 }
  0xa7   :  { %v59_v38 = vpop.permute.xlu0 %58 }
  0xa8   :  { %v2887_v39 = vmul.f32 %v2136_v37, %v59_v38 }
  0xaa   :  { %v74_v40 = vand.u32 2147483647, %v2887_v39  ;;  %v77_v41 = vand.u32 2139095040, %v2887_v39  ;;  %vm76_vm14 = vcmp.lt.s32.totalorder %v2887_v39, 0 }
  0xab   :  { %v64_v42 = vpop.permute.xlu0 %63 }
  0xac   :  { %v78_v43 = vshrl.u32 %v77_v41, 23  ;;  %v2891_v44 = vmul.f32 %v2136_v37, %v64_v42  ;;  %v81_v45 = vand.u32 8388607, %v74_v40  ;;  %vm2945_vm15 = vcmp.le.f32.partialorder %v74_v40, 0.7853982 }
  0xae   :  { %v2137_v46 = vadd.s32 4294967169, %v78_v43  ;;  %v180_v47 = vand.u32 2139095040, %v2891_v44  ;;  %v82_v49 = vor.u32 8388608, %v81_v45  ;;  %v177_v51 = vand.u32 2147483647, %v2891_v44 }
  0xb0   :  { %v84_v48 = vadd.s32 1, %v2137_v46  ;;  %v181_v50 = vshrl.u32 %v180_v47, 23  ;;  %v2897_v56 = vshll.u32 %v82_v49, 8  ;;  %v184_v60 = vand.u32 8388607, %v177_v51 }
  0xb2   :  { %vm85_vm0 = vcmp.gt.s32.totalorder %v84_v48, 0  ;;  %v2141_v53 = vadd.s32 4294967169, %v181_v50  ;;  %v185_v27 = vor.u32 8388608, %v184_v60 }
  0xb3   :  { %v86_v52 = vsel %vm85_vm0, %v84_v48, 0  ;;  %vm179_vm0 = vcmp.lt.s32.totalorder %v2891_v44, 0 }
  0xb4   :  { %v87_v54 = vshrl.u32 %v86_v52, 5  ;;  %v88_v55 = vand.u32 31, %v86_v52  ;;  %v187_v61 = vadd.s32 1, %v2141_v53  ;;  %v225_v42 = vshll.u32 %v185_v27, 8 }
  0xb6   :  { %v89_v57 = vsub.s32 32, %v88_v55  ;;  %v91_v59 = vshll.u32 %v2803_v58, %v88_v55  ;;  %v94_v63 = vshll.u32 %v2804_v62, %v88_v55  ;;  %v97_v2 = vshll.u32 %v2805_v1, %v88_v55 }
  0xb7   :  { %v100_v4 = vshll.u32 %v2806_v3, %v88_v55  ;;  %v103_v6 = vshll.u32 %v2807_v5, %v88_v55  ;;  %vm106_vm1 = vcmp.lt.s32.totalorder %v87_v54, 1  ;;  %vm108_vm2 = vcmp.lt.s32.totalorder %v87_v54, 3 }
  0xb8   :  { %v92_v7 = vshrl.u32 %v2804_v62, %v89_v57  ;;  %v95_v8 = vshrl.u32 %v2805_v1, %v89_v57  ;;  %v98_v9 = vshrl.u32 %v2806_v3, %v89_v57  ;;  %v90_v10 = vshrl.u32 %v2803_v58, %v89_v57 }
  0xb9   :  { %v101_v11 = vshrl.u32 %v2807_v5, %v89_v57  ;;  %v104_v13 = vshrl.u32 %v2808_v12, %v89_v57  ;;  %vm188_vm3 = vcmp.gt.s32.totalorder %v187_v61, 0  ;;  %vm109_vm4 = vcmp.lt.s32.totalorder %v87_v54, 4 }
  0xba   :  { %v93_v14 = vor.u32 %v92_v7, %v91_v59  ;;  %v96_v15 = vor.u32 %v95_v8, %v94_v63  ;;  %v99_v16 = vor.u32 %v98_v9, %v97_v2  ;;  %v189_v19 = vsel %vm188_vm3, %v187_v61, 0 }
  0xbb   :  { %v102_v17 = vor.u32 %v101_v11, %v100_v4  ;;  %v105_v18 = vor.u32 %v104_v13, %v103_v6  ;;  %vm107_vm5 = vcmp.lt.s32.totalorder %v87_v54, 2  ;;  %v191_v30 = vand.u32 31, %v189_v19 }
  0xbc   :  { %v110_v20 = vsel %vm106_vm1, %v90_v10, %v93_v14  ;;  %v111_v21 = vsel %vm109_vm4, %v99_v16, 2102212464  ;;  %v114_v22 = vsel %vm106_vm1, %v93_v14, %v96_v15  ;;  %v118_v23 = vsel %vm106_vm1, %v96_v15, %v99_v16 }
  0xbd   :  { %v112_v24 = vsel %vm108_vm2, %v96_v15, %v111_v21  ;;  %v115_v25 = vsel %vm109_vm4, %v102_v17, 920167782  ;;  %v119_v26 = vsel %vm109_vm4, %v105_v18, 1326507024  ;;  %v190_v38 = vshrl.u32 %v189_v19, 5 }
  0xbe   :  { %v116_v28 = vsel %vm108_vm2, %v99_v16, %v115_v25  ;;  %v120_v29 = vsel %vm108_vm2, %v102_v17, %v119_v26  ;;  %v113_v31 = vsel %vm107_vm5, %v110_v20, %v112_v24  ;;  %v192_v41 = vsub.s32 32, %v191_v30 }
  0xbf   :  { %v117_v32 = vsel %vm107_vm5, %v114_v22, %v116_v28  ;;  %v121_v33 = vsel %vm107_vm5, %v118_v23, %v120_v29  ;;  %v129_v43 = vmul.u32 %v2897_v56, %v113_v31  ;;  %v194_v45 = vshll.u32 %v2803_v58, %v191_v30 }
  0xc0   :  { %v2910_v34 = vmul.u32.u64.low %v2897_v56, %v121_v33  ;;  %v2911_v35 = vmul.u32.u64.high %v2897_v56, %v121_v33, %v2910_v34  ;;  %v2914_v36 = vmul.u32.u64.low %v2897_v56, %v117_v32  ;;  %v2915_v37 = vmul.u32.u64.high %v2897_v56, %v117_v32, %v2914_v36 }
  0xc1   :  { %v197_v46 = vshll.u32 %v2804_v62, %v191_v30  ;;  %v200_v47 = vshll.u32 %v2805_v1, %v191_v30  ;;  %v195_v48 = vshrl.u32 %v2804_v62, %v192_v41  ;;  %v198_v49 = vshrl.u32 %v2805_v1, %v192_v41 }
  0xc2   :  { %v201_v50 = vshrl.u32 %v2806_v3, %v192_v41  ;;  %v203_v52 = vshll.u32 %v2806_v3, %v191_v30  ;;  %vm131_vm6 = vc.u32 %v2911_v35, %v2914_v36  ;;  %v132_v53 = vadd.s32 1, %v2915_v37 }
  0xc3   :  { %v204_v54 = vshrl.u32 %v2807_v5, %v192_v41  ;;  %v206_v55 = vshll.u32 %v2807_v5, %v191_v30  ;;  %v196_v57 = vor.u32 %v195_v48, %v194_v45  ;;  %v199_v59 = vor.u32 %v198_v49, %v197_v46 }
  0xc4   :  { %v202_v60 = vor.u32 %v201_v50, %v200_v47  ;;  %v207_v61 = vshrl.u32 %v2808_v12, %v192_v41  ;;  %v133_v56 = vsel %vm131_vm6, %v132_v53, %v2915_v37  ;;  %vm209_vm7 = vcmp.lt.s32.totalorder %v190_v38, 1 }
  0xc5   :  { %v205_v63 = vor.u32 %v204_v54, %v203_v52  ;;  %vm212_vm8 = vcmp.lt.s32.totalorder %v190_v38, 4  ;;  %v134_v62 = vadd.s32 %v133_v56, %v129_v43  ;;  %vm211_vm9 = vcmp.lt.s32.totalorder %v190_v38, 3 }
  0xc6   :  { %v208_v1 = vor.u32 %v207_v61, %v206_v55  ;;  %v214_v2 = vsel %vm212_vm8, %v202_v60, 2102212464  ;;  %v193_v3 = vshrl.u32 %v2803_v58, %v192_v41  ;;  %v217_v4 = vsel %vm209_vm7, %v196_v57, %v199_v59 }
  0xc7   :  { %v218_v6 = vsel %vm212_vm8, %v205_v63, 920167782  ;;  %v221_v7 = vsel %vm209_vm7, %v199_v59, %v202_v60  ;;  %v135_v8 = vadd.s32 536870912, %v134_v62  ;;  %vm210_vm10 = vcmp.lt.s32.totalorder %v190_v38, 2 }
  0xc8   :  { %v219_v5 = vsel %vm211_vm9, %v202_v60, %v218_v6  ;;  %v222_v9 = vsel %vm212_vm8, %v208_v1, 1326507024  ;;  %v213_v10 = vsel %vm209_vm7, %v193_v3, %v196_v57  ;;  %v215_v11 = vsel %vm211_vm9, %v199_v59, %v214_v2  ;;  %v2484_v2 = vld [vmem:[#allocation2 + $0xc4] ss:$16 sps:$4 sm:$0xff]  }
  0xc9   :  { %v220_v12 = vsel %vm210_vm10, %v217_v4, %v219_v5  ;;  %v223_v13 = vsel %vm211_vm9, %v205_v63, %v222_v9  ;;  %v2925_v14 = vshrl.u32 %v135_v8, 30  ;;  %v216_v20 = vsel %vm210_vm10, %v213_v10, %v215_v11 }
  0xca   :  { %v224_v15 = vsel %vm210_vm10, %v221_v7, %v223_v13  ;;  %v2927_v16 = vmul.u32.u64.low %v225_v42, %v220_v12  ;;  %v2928_v17 = vmul.u32.u64.high %v225_v42, %v220_v12, %v2927_v16  ;;  %v232_v23 = vmul.u32 %v225_v42, %v216_v20 }
  0xcb   :  { %v2930_v18 = vmul.u32.u64.low %v225_v42, %v224_v15  ;;  %v2931_v19 = vmul.u32.u64.high %v225_v42, %v224_v15, %v2930_v18  ;;  %v137_v58 = vshll.u32 %v2925_v14, 30  ;;  %v130_v37 = vadd.s32 %v2914_v36, %v2911_v35 }
  0xcc   :  { %v235_v22 = vadd.s32 1, %v2928_v17  ;;  %v160_v8 = vsub.s32 4, %v2925_v14  ;;  %vm178_vm1 = vcmp.le.f32.partialorder %v177_v51, 0.7853982  ;;  %vm166_vm8 = vweird.f32 %v2887_v39 }
  0xcd   :  { %v138_v21 = vsub.s32 %v134_v62, %v137_v58  ;;  %vm234_vm11 = vc.u32 %v2931_v19, %v2927_v16  ;;  %v233_v60 = vadd.s32 %v2927_v16, %v2931_v19  ;;  %vm269_vm9 = vweird.f32 %v2891_v44 }
  0xce   :  { %v236_v25 = vsel %vm234_vm11, %v235_v22, %v2928_v17  ;;  %v161_v40 = vsel %vm76_vm14, %v160_v8, %v2925_v14  ;;  %v2485_v8 = vld [vmem:[#allocation2 + $0xc8] ss:$16 sps:$4 sm:$0xff]  }
  0xcf   :  { %v140_v24 = vsub.s32 0, %v138_v21  ;;  %v237_v26 = vadd.s32 %v236_v25, %v232_v23  ;;  %v2961_v15 = vsel %vm2945_vm15, 0, %v161_v40 }
  0xd0   :  { %v373_v14 = vadd.s32 3, %v2961_v15 }
  0xd1   :  { %v2138_v27 = vmin.u32 %v140_v24, %v138_v21  ;;  %v238_v28 = vadd.s32 536870912, %v237_v26 }
  0xd2   :  { %v374_v20 = vand.u32 3, %v373_v14 }
  0xd3   :  { %v142_v29 = vclz %v2138_v27  ;;  %v239_v30 = vshrl.u32 %v238_v28, 30 }
  0xd4   :  { %vm376_vm2 = vcmp.eq.s32.totalorder %v374_v20, 0  ;;  %vm379_vm3 = vcmp.eq.s32.totalorder %v374_v20, 2  ;;  %vm375_vm4 = vcmp.lt.s32.totalorder %v374_v20, 2  ;;  %v2502_v20 = vld [vmem:[#allocation5 + $0x24] ss:$16 sps:$4 sm:$0xff]  }
  0xd5   :  { %v2139_v31 = vadd.s32 4294967294, %v142_v29  ;;  %v240_v32 = vshll.u32 %v239_v30, 30  ;;  %v263_v11 = vsub.s32 4, %v239_v30 }
  0xd7   :  { %vm2140_vm12 = vcmp.lt.s32.totalorder %v2139_v31, 0  ;;  %v241_v34 = vsub.s32 %v237_v26, %v240_v32  ;;  %v264_v16 = vsel %vm179_vm0, %v263_v11, %v239_v30 }
  0xd8   :  { %v145_v33 = vsel %vm2140_vm12, 0, %v2139_v31  ;;  %v2964_v18 = vsel %vm178_vm1, 0, %v264_v16  ;;  %v2496_v16 = vld [vmem:[#allocation5 + $0x4] ss:$16 sps:$4 sm:$0xff]  }
  0xd9   :  { %v146_v38 = vsub.s32 32, %v145_v33  ;;  %v150_v41 = vsub.s32 4294967266, %v145_v33  ;;  %v243_v42 = vsub.s32 0, %v241_v34  ;;  %v147_v43 = vshll.u32 %v138_v21, %v145_v33 }
  0xda   :  { %v477_v51 = vadd.s32 3, %v2964_v18 }
  0xdb   :  { %v148_v45 = vshrl.u32 %v130_v37, %v146_v38  ;;  %v151_v46 = vadd.s32 127, %v150_v41  ;;  %v2142_v47 = vmin.u32 %v243_v42, %v241_v34  ;;  %v2449_v37 = vld [vmem:[#allocation2 + $0x8] ss:$16 sps:$4 sm:$0xff]  }
  0xdc   :  { %v478_v23 = vand.u32 3, %v477_v51 }
  0xdd   :  { %v149_v48 = vor.u32 %v148_v45, %v147_v43  ;;  %v152_v49 = vshll.u32 %v151_v46, 23  ;;  %v245_v50 = vclz %v2142_v47  ;;  %v2454_v43 = vld [vmem:[#allocation2 + $0x24] ss:$16 sps:$4 sm:$0xff]   ;;  %v2457_v45 = vld [vmem:[#allocation2 + $0x2c] ss:$16 sps:$4 sm:$0xff]  }
  0xde   :  { %vm483_vm5 = vcmp.eq.s32.totalorder %v478_v23, 2  ;;  %vm480_vm6 = vcmp.eq.s32.totalorder %v478_v23, 0  ;;  %vm479_vm7 = vcmp.lt.s32.totalorder %v478_v23, 2  ;;  %v2452_v46 = vld [vmem:[#allocation2 + $0x20] ss:$16 sps:$4 sm:$0xff]  }
  0xdf   :  { %v153_v52 = vor.u32 4788187, %v152_v49  ;;  %v2143_v53 = vadd.s32 4294967294, %v245_v50  ;;  %v156_v55 = vcvt.s32.f32 %v149_v48  ;;  %v2455_v47 = vld [vmem:[#allocation2 + $0x28] ss:$16 sps:$4 sm:$0xff]  }
  0xe0   :  { %v2460_v48 = vld [vmem:[#allocation2 + $0x44] ss:$16 sps:$4 sm:$0xff]   ;;  %v2463_v49 = vld [vmem:[#allocation2 + $0x4c] ss:$16 sps:$4 sm:$0xff]   ;;  %v2458_v50 = vld [vmem:[#allocation2 + $0x40] ss:$16 sps:$4 sm:$0xff]  }
  0xe1   :  { %v154_v54 = vand.u32 2147483647, %v153_v52  ;;  %vm2144_vm13 = vcmp.lt.s32.totalorder %v2143_v53, 0  ;;  %v2461_v52 = vld [vmem:[#allocation2 + $0x48] ss:$16 sps:$4 sm:$0xff]  }
  0xe2   :  { %v248_v59 = vsel %vm2144_vm13, 0, %v2143_v53  ;;  %v2466_v53 = vld [vmem:[#allocation2 + $0x64] ss:$16 sps:$4 sm:$0xff]   ;;  %v2503_v23 = vld [vmem:[#allocation5 + $0x28] ss:$16 sps:$4 sm:$0xff]  }
  0xe3   :  { %v157_v57 = vmul.f32 %v156_v55, %v154_v54  ;;  %v249_v35 = vsub.s32 32, %v248_v59  ;;  %v253_v36 = vsub.s32 4294967266, %v248_v59  ;;  %v250_v56 = vshll.u32 %v241_v34, %v248_v59  ;;  %v2446_v34 = vld [vmem:[#allocation2] ss:$16 sps:$4 sm:$0xff]   ;;  %v2469_v54 = vld [vmem:[#allocation2 + $0x6c] ss:$16 sps:$4 sm:$0xff]  }
  0xe4   :  { %v2464_v55 = vld [vmem:[#allocation2 + $0x60] ss:$16 sps:$4 sm:$0xff]   ;;  %v2472_v59 = vld [vmem:[#allocation2 + $0x84] ss:$16 sps:$4 sm:$0xff]  }
  0xe5   :  { %v158_v61 = vxor.u32 2147483648, %v157_v57  ;;  %v251_v63 = vshrl.u32 %v233_v60, %v249_v35  ;;  %v254_v62 = vadd.s32 127, %v253_v36  ;;  %v2475_v60 = vld [vmem:[#allocation2 + $0x8c] ss:$16 sps:$4 sm:$0xff]   ;;  %v2470_v35 = vld [vmem:[#allocation2 + $0x80] ss:$16 sps:$4 sm:$0xff]  }
  0xe6   :  { %v2478_v36 = vld [vmem:[#allocation2 + $0xa4] ss:$16 sps:$4 sm:$0xff]  }
  0xe7   :  { %v159_v1 = vsel %vm76_vm14, %v158_v61, %v157_v57  ;;  %v252_v3 = vor.u32 %v251_v63, %v250_v56  ;;  %v255_v4 = vshll.u32 %v254_v62, 23  ;;  %v2467_v57 = vld [vmem:[#allocation2 + $0x68] ss:$16 sps:$4 sm:$0xff]   ;;  %v2481_v61 = vld [vmem:[#allocation2 + $0xac] ss:$16 sps:$4 sm:$0xff]   ;;  %v270_v56 = vand.u32 3, %v2964_v18 }
  0xe8   :  { %v162_v6 = vsel %vm2945_vm15, %v2887_v39, %v159_v1  ;;  %v2476_v63 = vld [vmem:[#allocation2 + $0xa0] ss:$16 sps:$4 sm:$0xff]   ;;  %v2479_v62 = vld [vmem:[#allocation2 + $0xa8] ss:$16 sps:$4 sm:$0xff]   ;;  %v167_v1 = vand.u32 3, %v2961_v15 }
  0xe9   :  { %v256_v7 = vor.u32 4788187, %v255_v4  ;;  %2686 = vcosq.f32 %v162_v6  ;;  %v259_v9 = vcvt.s32.f32 %v252_v3  ;;  %v2487_v3 = vld [vmem:[#allocation2 + $0xcc] ss:$16 sps:$4 sm:$0xff]   ;;  %vm272_vm10 = vcmp.eq.s32.totalorder %v270_v56, 0 }
  0xea   :  { %2688 = vsinq.f32 %v162_v6  ;;  %vm275_vm11 = vcmp.eq.s32.totalorder %v270_v56, 2  ;;  %vm169_vm12 = vcmp.eq.s32.totalorder %v167_v1, 0  ;;  %vm172_vm13 = vcmp.eq.s32.totalorder %v167_v1, 2  ;;  %v2511_v39 = vld [vmem:[#allocation5 + $0x4c] ss:$16 sps:$4 sm:$0xff]  }
  0xeb   :  { %v257_v5 = vand.u32 2147483647, %v256_v7  ;;  %v2482_v7 = vld [vmem:[#allocation2 + $0xc0] ss:$16 sps:$4 sm:$0xff]   ;;  %vm271_vm14 = vcmp.lt.s32.totalorder %v270_v56, 2  ;;  %vm168_vm15 = vcmp.lt.s32.totalorder %v167_v1, 2 }
  0xec   :  { %v2557_v56 = vld [vmem:[#allocation5 + $0x148] ss:$16 sps:$4 sm:$0xff]   ;;  %v2560_v1 = vld [vmem:[#allocation5 + $0x160] ss:$16 sps:$4 sm:$0xff]  }
  0xed   :  { %v260_v10 = vmul.f32 %v259_v9, %v257_v5  ;;  %v2490_v5 = vld [vmem:[#allocation2 + $0xe4] ss:$16 sps:$4 sm:$0xff]   ;;  %v2493_v9 = vld [vmem:[#allocation2 + $0xec] ss:$16 sps:$4 sm:$0xff]  }
  0xef   :  { %v261_v12 = vxor.u32 2147483648, %v260_v10 }
  0xf1   :  { %v262_v13 = vsel %vm179_vm0, %v261_v12, %v260_v10  ;;  %v2488_v12 = vld [vmem:[#allocation2 + $0xe0] ss:$16 sps:$4 sm:$0xff]  }
  0xf2   :  { %v265_v17 = vsel %vm178_vm1, %v2891_v44, %v262_v13  ;;  %v2491_v13 = vld [vmem:[#allocation2 + $0xe8] ss:$16 sps:$4 sm:$0xff]   ;;  %v2508_v44 = vld [vmem:[#allocation5 + $0x44] ss:$16 sps:$4 sm:$0xff]  }
  0xf3   :  { %2690 = vcosq.f32 %v265_v17  ;;  %v2967_v19 = vpop.eup %2686 }
  0xf4   :  { %2692 = vsinq.f32 %v265_v17  ;;  %v2969_v58 = vpop.eup %2688  ;;  %v173_v22 = vxor.u32 2147483648, %v2967_v19  ;;  %v2499_v17 = vld [vmem:[#allocation5 + $0xc] ss:$16 sps:$4 sm:$0xff]  }
  0xf5   :  { %v170_v21 = vxor.u32 2147483648, %v2969_v58 }
  0xf6   :  { %v381_v26 = vsel %vm379_vm3, %v173_v22, %v2969_v58  ;;  %v174_v11 = vsel %vm172_vm13, %v173_v22, %v2969_v58  ;;  %v2497_v58 = vld [vmem:[#allocation5 + $0x8] ss:$16 sps:$4 sm:$0xff]   ;;  %v2500_v22 = vld [vmem:[#allocation5 + $0x20] ss:$16 sps:$4 sm:$0xff]  }
  0xf7   :  { %v378_v25 = vsel %vm376_vm2, %v2967_v19, %v170_v21  ;;  %v171_v10 = vsel %vm169_vm12, %v2967_v19, %v170_v21  ;;  %v2494_v19 = vld [vmem:[#allocation5] ss:$16 sps:$4 sm:$0xff]   ;;  %v2505_v21 = vld [vmem:[#allocation5 + $0x2c] ss:$16 sps:$4 sm:$0xff]  }
  0xf8   :  { %v382_v30 = vsel %vm375_vm4, %v378_v25, %v381_v26  ;;  %v175_v15 = vsel %vm168_vm15, %v171_v10, %v174_v11  ;;  %v2509_v25 = vld [vmem:[#allocation5 + $0x48] ss:$16 sps:$4 sm:$0xff]   ;;  %v2514_v26 = vld [vmem:[#allocation5 + $0x64] ss:$16 sps:$4 sm:$0xff]  }
  0xf9   :  { %v383_v38 = vsel %vm166_vm8, nan, %v382_v30  ;;  %v176_v14 = vsel %vm166_vm8, nan, %v175_v15  ;;  %v2520_v30 = vld [vmem:[#allocation5 + $0x84] ss:$16 sps:$4 sm:$0xff]   ;;  %v2575_v10 = vld [vmem:[#allocation5 + $0x1a8] ss:$16 sps:$4 sm:$0xff]  }
  0xfa   :  { %v2580_v11 = vld [vmem:[#allocation5 + $0x1c4] ss:$16 sps:$4 sm:$0xff]  }
  0xfb   :  { %v2586_v15 = vld [vmem:[#allocation5 + $0x1e4] ss:$16 sps:$4 sm:$0xff]  }
  0xfd   :  { %v2974_v24 = vpop.eup %2690 }
  0xfe   :  { %v2982_v27 = vpop.eup %2692  ;;  %v276_v28 = vxor.u32 2147483648, %v2974_v24 }
  0xff   :  { %v273_v29 = vxor.u32 2147483648, %v2982_v27 }
 0x100   :  { %v485_v31 = vsel %vm483_vm5, %v276_v28, %v2982_v27  ;;  %v277_v6 = vsel %vm275_vm11, %v276_v28, %v2982_v27  ;;  %v2517_v27 = vld [vmem:[#allocation5 + $0x6c] ss:$16 sps:$4 sm:$0xff]   ;;  %v2512_v28 = vld [vmem:[#allocation5 + $0x60] ss:$16 sps:$4 sm:$0xff]  }
 0x101   :  { %v482_v32 = vsel %vm480_vm6, %v2974_v24, %v273_v29  ;;  %v274_v4 = vsel %vm272_vm10, %v2974_v24, %v273_v29  ;;  %v2506_v24 = vld [vmem:[#allocation5 + $0x40] ss:$16 sps:$4 sm:$0xff]   ;;  %v2515_v29 = vld [vmem:[#allocation5 + $0x68] ss:$16 sps:$4 sm:$0xff]  }
 0x102   :  { %v486_v33 = vsel %vm479_vm7, %v482_v32, %v485_v31  ;;  %v278_v40 = vsel %vm271_vm14, %v274_v4, %v277_v6  ;;  %v2523_v31 = vld [vmem:[#allocation5 + $0x8c] ss:$16 sps:$4 sm:$0xff]   ;;  %v2518_v32 = vld [vmem:[#allocation5 + $0x80] ss:$16 sps:$4 sm:$0xff]  }
 0x103   :  { %v487_v41 = vsel %vm269_vm9, nan, %v486_v33  ;;  %v279_v18 = vsel %vm269_vm9, nan, %v278_v40  ;;  %v2521_v33 = vld [vmem:[#allocation5 + $0x88] ss:$16 sps:$4 sm:$0xff]   ;;  %v2571_v4 = vld [vmem:[#allocation5 + $0x18c] ss:$16 sps:$4 sm:$0xff]  }
 0x104   :  { %v521_v42 = vpack.c.bf16 %v487_v41, %v383_v38  ;;  %v488_v51 = vpack.c.bf16 %v279_v18, %v176_v14  ;;  %v2524_v38 = vld [vmem:[#allocation5 + $0xa0] ss:$16 sps:$4 sm:$0xff]   ;;  %v2527_v41 = vld [vmem:[#allocation5 + $0xa8] ss:$16 sps:$4 sm:$0xff]   ;;  %v2583_v40 = vld [vmem:[#allocation5 + $0x1cc] ss:$16 sps:$4 sm:$0xff]  }
 0x105   :  { %v2566_v6 = vld [vmem:[#allocation5 + $0x180] ss:$16 sps:$4 sm:$0xff]   ;;  %v2587_v18 = vld [vmem:[#allocation5 + $0x1e8] ss:$16 sps:$4 sm:$0xff]   ;;  %v2592_v14 = vld [vmem:[#allocation5 + $0x204] ss:$16 sps:$4 sm:$0xff]  }
 0x106   :  { %747 = vmatmul.mubr.bf16.vlgmr.msra.gmra.mrb[0].mxu0 %v521_v42  ;;  %790 = vmatmul.mubr.bf16.vlgmr.msra.gmra.mrb[0].mxu1 %v521_v42  ;;  %v2532_v42 = vld [vmem:[#allocation5 + $0xc4] ss:$16 sps:$4 sm:$0xff]  }
 0x107   :  { %961 = vmatpush1.bf16.msra.mxu0 %v2446_v34  ;;  %1004 = vmatpush1.bf16.msra.mxu1 %v2449_v37  ;;  %v2526_v34 = vld [vmem:[#allocation5 + $0xa4] ss:$16 sps:$4 sm:$0xff]   ;;  %v2529_v37 = vld [vmem:[#allocation5 + $0xac] ss:$16 sps:$4 sm:$0xff]  }
 0x108   :  { %962 = vmatprep.subr.bf16.mxu0 %v2454_v43  ;;  %1005 = vmatprep.subr.bf16.mxu1 %v2457_v45  ;;  %v2535_v43 = vld [vmem:[#allocation5 + $0xcc] ss:$16 sps:$4 sm:$0xff]   ;;  %v2530_v45 = vld [vmem:[#allocation5 + $0xc0] ss:$16 sps:$4 sm:$0xff]  }
 0x109   :  { %992 = vmatprep.mubr.bf16.mxu0 %v2802_v0  ;;  %1035 = vmatprep.mubr.bf16.mxu1 %v2802_v0  ;;  %v2473_v0 = vld [vmem:[#allocation2 + $0x88] ss:$16 sps:$4 sm:$0xff]  }
 0x10b   :  { %963 = vmatpush1.bf16.msra.mxu0 %v2452_v46  ;;  %1006 = vmatpush1.bf16.msra.mxu1 %v2455_v47  ;;  %v2533_v46 = vld [vmem:[#allocation5 + $0xc8] ss:$16 sps:$4 sm:$0xff]   ;;  %v2538_v47 = vld [vmem:[#allocation5 + $0xe4] ss:$16 sps:$4 sm:$0xff]  }
 0x10c   :  { %964 = vmatprep.subr.bf16.mxu0 %v2460_v48  ;;  %1007 = vmatprep.subr.bf16.mxu1 %v2463_v49  ;;  %v2541_v48 = vld [vmem:[#allocation5 + $0xec] ss:$16 sps:$4 sm:$0xff]   ;;  %v2536_v49 = vld [vmem:[#allocation5 + $0xe0] ss:$16 sps:$4 sm:$0xff]  }
 0x10f   :  { %965 = vmatpush1.bf16.msra.mxu0 %v2458_v50  ;;  %1008 = vmatpush1.bf16.msra.mxu1 %v2461_v52  ;;  %v2539_v50 = vld [vmem:[#allocation5 + $0xe8] ss:$16 sps:$4 sm:$0xff]   ;;  %v2544_v52 = vld [vmem:[#allocation5 + $0x104] ss:$16 sps:$4 sm:$0xff]  }
 0x110   :  { %966 = vmatprep.subr.bf16.mxu0 %v2466_v53  ;;  %1009 = vmatprep.subr.bf16.mxu1 %v2469_v54  ;;  %v2547_v53 = vld [vmem:[#allocation5 + $0x10c] ss:$16 sps:$4 sm:$0xff]   ;;  %v2542_v54 = vld [vmem:[#allocation5 + $0x100] ss:$16 sps:$4 sm:$0xff]  }
 0x113   :  { %967 = vmatpush1.bf16.msra.mxu0 %v2464_v55  ;;  %1010 = vmatpush1.bf16.msra.mxu1 %v2467_v57  ;;  %v2545_v55 = vld [vmem:[#allocation5 + $0x108] ss:$16 sps:$4 sm:$0xff]   ;;  %v2550_v57 = vld [vmem:[#allocation5 + $0x124] ss:$16 sps:$4 sm:$0xff]  }
 0x114   :  { %968 = vmatprep.subr.bf16.mxu0 %v2472_v59  ;;  %1011 = vmatprep.subr.bf16.mxu1 %v2475_v60  ;;  %v2553_v59 = vld [vmem:[#allocation5 + $0x12c] ss:$16 sps:$4 sm:$0xff]   ;;  %v2548_v60 = vld [vmem:[#allocation5 + $0x120] ss:$16 sps:$4 sm:$0xff]  }
 0x117   :  { %969 = vmatpush1.bf16.msra.mxu0 %v2470_v35  ;;  %1012 = vmatpush1.bf16.msra.mxu1 %v2473_v0  ;;  %v2551_v35 = vld [vmem:[#allocation5 + $0x128] ss:$16 sps:$4 sm:$0xff]   ;;  %v2556_v0 = vld [vmem:[#allocation5 + $0x144] ss:$16 sps:$4 sm:$0xff]  }
 0x118   :  { %970 = vmatprep.subr.bf16.mxu0 %v2478_v36  ;;  %1013 = vmatprep.subr.bf16.mxu1 %v2481_v61  ;;  %v2559_v36 = vld [vmem:[#allocation5 + $0x14c] ss:$16 sps:$4 sm:$0xff]   ;;  %v2554_v61 = vld [vmem:[#allocation5 + $0x140] ss:$16 sps:$4 sm:$0xff]  }
 0x11b   :  { %971 = vmatpush1.bf16.msra.mxu0 %v2476_v63  ;;  %1014 = vmatpush1.bf16.msra.mxu1 %v2479_v62  ;;  %v2562_v63 = vld [vmem:[#allocation5 + $0x164] ss:$16 sps:$4 sm:$0xff]   ;;  %v2565_v62 = vld [vmem:[#allocation5 + $0x16c] ss:$16 sps:$4 sm:$0xff]  }
 0x11c   :  { %972 = vmatprep.subr.bf16.mxu0 %v2484_v2  ;;  %1015 = vmatprep.subr.bf16.mxu1 %v2487_v3  ;;  %v2563_v2 = vld [vmem:[#allocation5 + $0x168] ss:$16 sps:$4 sm:$0xff]   ;;  %v2568_v3 = vld [vmem:[#allocation5 + $0x184] ss:$16 sps:$4 sm:$0xff]  }
 0x11f   :  { %973 = vmatpush1.bf16.msra.mxu0 %v2482_v7  ;;  %1016 = vmatpush1.bf16.msra.mxu1 %v2485_v8  ;;  %v2569_v7 = vld [vmem:[#allocation5 + $0x188] ss:$16 sps:$4 sm:$0xff]   ;;  %v2574_v8 = vld [vmem:[#allocation5 + $0x1a4] ss:$16 sps:$4 sm:$0xff]  }
 0x120   :  { %974 = vmatprep.subr.bf16.mxu0 %v2490_v5  ;;  %1017 = vmatprep.subr.bf16.mxu1 %v2493_v9  ;;  %v2577_v5 = vld [vmem:[#allocation5 + $0x1ac] ss:$16 sps:$4 sm:$0xff]   ;;  %v2572_v9 = vld [vmem:[#allocation5 + $0x1a0] ss:$16 sps:$4 sm:$0xff]  }
 0x123   :  { %975 = vmatpush1.bf16.msra.mxu0 %v2488_v12  ;;  %1018 = vmatpush1.bf16.msra.mxu1 %v2491_v13  ;;  %v2578_v12 = vld [vmem:[#allocation5 + $0x1c0] ss:$16 sps:$4 sm:$0xff]   ;;  %v2581_v13 = vld [vmem:[#allocation5 + $0x1c8] ss:$16 sps:$4 sm:$0xff]  }
 0x124   :  { %1918 = vmatprep.subr.bf16.mxu0 %v2496_v16  ;;  %2004 = vmatprep.subr.bf16.mxu1 %v2499_v17  ;;  %v2589_v16 = vld [vmem:[#allocation5 + $0x1ec] ss:$16 sps:$4 sm:$0xff]   ;;  %v2584_v17 = vld [vmem:[#allocation5 + $0x1e0] ss:$16 sps:$4 sm:$0xff]  }
 0x126   :  { %993 = vmatmul.mubr.bf16.vlgmr.msra.gmra.mrb[0].mxu0 %v488_v51  ;;  %1036 = vmatmul.mubr.bf16.vlgmr.msra.gmra.mrb[0].mxu1 %v488_v51 }
 0x127   :  { %1919 = vmatpush1.bf16.msra.mxu0 %v2494_v19  ;;  %2005 = vmatpush1.bf16.msra.mxu1 %v2497_v58  ;;  %v2595_v19 = vld [vmem:[#allocation5 + $0x20c] ss:$16 sps:$4 sm:$0xff]   ;;  %v1048_v58 = vlaneseq }
 0x128   :  { %1920 = vmatprep.subr.bf16.mxu0 %v2502_v20  ;;  %2006 = vmatprep.subr.bf16.mxu1 %v2505_v21 }
 0x129   :  { %v3018_v51 = vshrl.u32 %v1048_v58, 7 }
 0x12b   :  { %1921 = vmatpush1.bf16.msra.mxu0 %v2500_v22  ;;  %2007 = vmatpush1.bf16.msra.mxu1 %v2503_v23  ;;  %v1050_v20 = vsub.s32 0, %v3018_v51  ;;  %v1058_v21 = vsub.s32 2, %v3018_v51  ;;  %v1046_v22 = vld [vmem:[%s3084_s3] sm:$0xf]  ;;  %v1054_v23 = vsub.s32 1, %v3018_v51 }
 0x12c   :  { %1922 = vmatprep.subr.bf16.mxu0 %v2508_v44  ;;  %2008 = vmatprep.subr.bf16.mxu1 %v2511_v39  ;;  %v1062_v44 = vsub.s32 3, %v3018_v51 }
 0x12d   :  { %v1051_v39 = vrot.slane %v1046_v22, %v1050_v20 }
 0x12f   :  { %1923 = vmatpush1.bf16.msra.mxu0 %v2506_v24  ;;  %2009 = vmatpush1.bf16.msra.mxu1 %v2509_v25  ;;  %v1059_v24 = vrot.slane %v1046_v22, %v1058_v21  ;;  %v1055_v25 = vrot.slane %v1046_v22, %v1054_v23 }
 0x130   :  { %1924 = vmatprep.subr.bf16.mxu0 %v2514_v26  ;;  %2010 = vmatprep.subr.bf16.mxu1 %v2517_v27  ;;  %v1063_v26 = vrot.slane %v1046_v22, %v1062_v44 }
 0x133   :  { %1925 = vmatpush1.bf16.msra.mxu0 %v2512_v28  ;;  %2011 = vmatpush1.bf16.msra.mxu1 %v2515_v29 }
 0x134   :  { %1926 = vmatprep.subr.bf16.mxu0 %v2520_v30  ;;  %2012 = vmatprep.subr.bf16.mxu1 %v2523_v31 }
 0x137   :  { %1927 = vmatpush1.bf16.msra.mxu0 %v2518_v32  ;;  %2013 = vmatpush1.bf16.msra.mxu1 %v2521_v33 }
 0x138   :  { %1928 = vmatprep.subr.bf16.mxu0 %v2526_v34  ;;  %2014 = vmatprep.subr.bf16.mxu1 %v2529_v37 }
 0x13b   :  { %1929 = vmatpush1.bf16.msra.mxu0 %v2524_v38  ;;  %2015 = vmatpush1.bf16.msra.mxu1 %v2527_v41 }
 0x13c   :  { %1930 = vmatprep.subr.bf16.mxu0 %v2532_v42  ;;  %2016 = vmatprep.subr.bf16.mxu1 %v2535_v43 }
 0x13f   :  { %1931 = vmatpush1.bf16.msra.mxu0 %v2530_v45  ;;  %2017 = vmatpush1.bf16.msra.mxu1 %v2533_v46 }
 0x140   :  { %1932 = vmatprep.subr.bf16.mxu0 %v2538_v47  ;;  %2018 = vmatprep.subr.bf16.mxu1 %v2541_v48 }
 0x143   :  { %1933 = vmatpush1.bf16.msra.mxu0 %v2536_v49  ;;  %2019 = vmatpush1.bf16.msra.mxu1 %v2539_v50 }
 0x144   :  { %1934 = vmatprep.subr.bf16.mxu0 %v2544_v52  ;;  %2020 = vmatprep.subr.bf16.mxu1 %v2547_v53 }
 0x147   :  { %1935 = vmatpush1.bf16.msra.mxu0 %v2542_v54  ;;  %2021 = vmatpush1.bf16.msra.mxu1 %v2545_v55 }
 0x148   :  { %1936 = vmatprep.subr.bf16.mxu0 %v2550_v57  ;;  %2022 = vmatprep.subr.bf16.mxu1 %v2553_v59 }
 0x14b   :  { %1937 = vmatpush1.bf16.msra.mxu0 %v2548_v60  ;;  %2023 = vmatpush1.bf16.msra.mxu1 %v2551_v35 }
 0x14c   :  { %1938 = vmatprep.subr.bf16.mxu0 %v2556_v0  ;;  %2024 = vmatprep.subr.bf16.mxu1 %v2559_v36 }
 0x14f   :  { %1939 = vmatpush1.bf16.msra.mxu0 %v2554_v61  ;;  %2025 = vmatpush1.bf16.msra.mxu1 %v2557_v56 }
 0x150   :  { %1940 = vmatprep.subr.bf16.mxu0 %v2562_v63  ;;  %2026 = vmatprep.subr.bf16.mxu1 %v2565_v62 }
 0x153   :  { %1941 = vmatpush1.bf16.msra.mxu0 %v2560_v1  ;;  %2027 = vmatpush1.bf16.msra.mxu1 %v2563_v2 }
 0x154   :  { %1942 = vmatprep.subr.bf16.mxu0 %v2568_v3  ;;  %2028 = vmatprep.subr.bf16.mxu1 %v2571_v4 }
 0x157   :  { %1943 = vmatpush1.bf16.msra.mxu0 %v2566_v6  ;;  %2029 = vmatpush1.bf16.msra.mxu1 %v2569_v7 }
 0x158   :  { %1944 = vmatprep.subr.bf16.mxu0 %v2574_v8  ;;  %2030 = vmatprep.subr.bf16.mxu1 %v2577_v5 }
 0x15b   :  { %1945 = vmatpush1.bf16.msra.mxu0 %v2572_v9  ;;  %2031 = vmatpush1.bf16.msra.mxu1 %v2575_v10 }
 0x15c   :  { %1946 = vmatprep.subr.bf16.mxu0 %v2580_v11  ;;  %2032 = vmatprep.subr.bf16.mxu1 %v2583_v40 }
 0x15f   :  { %1947 = vmatpush1.bf16.msra.mxu0 %v2578_v12  ;;  %2033 = vmatpush1.bf16.msra.mxu1 %v2581_v13 }
 0x160   :  { %1948 = vmatprep.subr.bf16.mxu0 %v2586_v15  ;;  %2034 = vmatprep.subr.bf16.mxu1 %v2589_v16 }
 0x163   :  { %1949 = vmatpush1.bf16.msra.mxu0 %v2584_v17  ;;  %2035 = vmatpush1.bf16.msra.mxu1 %v2587_v18 }
 0x164   :  { %1961 = vmatprep.subr.bf16.mxu0 %v2592_v14  ;;  %2047 = vmatprep.subr.bf16.mxu1 %v2595_v19 }
 0x1f9   :  { %v994_v27 = vpop.f32.mrb[0].mxu0  ;;  %v1037_v28 = vpop.f32.mrb[0].mxu1 }
 0x1fa   :  { %v3035_v29 = vadd.f32 %v1051_v39, %v994_v27  ;;  %v3037_v30 = vadd.f32 %v1059_v24, %v1037_v28  ;;  %v996_v31 = vpop.f32.mrb[1].mxu0  ;;  %v1039_v32 = vpop.f32.mrb[1].mxu1 }
 0x1fb   :  { %v3039_v33 = vadd.f32 %v1055_v25, %v996_v31  ;;  %v3041_v34 = vadd.f32 %v1063_v26, %v1039_v32  ;;  %v998_v37 = vpop.f32.mrb[2].mxu0  ;;  %v1041_v38 = vpop.f32.mrb[2].mxu1 }
 0x1fc   :  { %v1076_v41 = vsub.f32 0.0, %v3035_v29  ;;  %v1078_v42 = vsub.f32 0.0, %v3037_v30  ;;  %v1072_v43 = vadd.f32 %v1051_v39, %v998_v37  ;;  %v1074_v45 = vadd.f32 %v1059_v24, %v1041_v38  ;;  %v1000_v46 = vpop.f32.mrb[3].mxu0  ;;  %v1043_v47 = vpop.f32.mrb[3].mxu1 }
 0x1fd   :  { %v1077_v48 = vsub.f32 0.0, %v3039_v33  ;;  %v1079_v49 = vsub.f32 0.0, %v3041_v34  ;;  %v1073_v50 = vadd.f32 %v1055_v25, %v1000_v46  ;;  %v1075_v52 = vadd.f32 %v1063_v26, %v1043_v47  ;;  %v2590_v46 = vld [vmem:[#allocation5 + $0x200] ss:$16 sps:$4 sm:$0xff]   ;;  %v2593_v47 = vld [vmem:[#allocation5 + $0x208] ss:$16 sps:$4 sm:$0xff]  }
 0x1fe   :  { %v1084_v53 = vmul.f32 1.442695, %v1076_v41  ;;  %v1088_v54 = vmul.f32 1.442695, %v1078_v42  ;;  %v1080_v55 = vsub.f32 0.0, %v1072_v43  ;;  %v1082_v57 = vsub.f32 0.0, %v1074_v45 }
 0x1ff   :  { %v1086_v59 = vmul.f32 1.442695, %v1077_v48  ;;  %v1090_v60 = vmul.f32 1.442695, %v1079_v49  ;;  %v1081_v35 = vsub.f32 0.0, %v1073_v50  ;;  %v1083_v0 = vsub.f32 0.0, %v1075_v52 }
 0x200   :  { %2694 = vpow2.f32 %v1084_v53  ;;  %v1092_v36 = vmul.f32 1.442695, %v1080_v55  ;;  %v1096_v61 = vmul.f32 1.442695, %v1082_v57  ;;  %v2602_v49 = vld [vmem:[#allocation5 + $0x240] ss:$16 sps:$4 sm:$0xff]  }
 0x201   :  { %2696 = vpow2.f32 %v1088_v54  ;;  %v1094_v56 = vmul.f32 1.442695, %v1081_v35  ;;  %v1098_v63 = vmul.f32 1.442695, %v1083_v0  ;;  %v2613_v53 = vld [vmem:[#allocation5 + $0x26c] ss:$16 sps:$4 sm:$0xff]  }
 0x202   :  { %2698 = vpow2.f32 %v1086_v59  ;;  %v2608_v54 = vld [vmem:[#allocation5 + $0x260] ss:$16 sps:$4 sm:$0xff]   ;;  %v2611_v55 = vld [vmem:[#allocation5 + $0x268] ss:$16 sps:$4 sm:$0xff]   ;;  %v2616_v57 = vld [vmem:[#allocation5 + $0x284] ss:$16 sps:$4 sm:$0xff]  }
 0x203   :  { %2700 = vpow2.f32 %v1090_v60  ;;  %v2619_v59 = vld [vmem:[#allocation5 + $0x28c] ss:$16 sps:$4 sm:$0xff]   ;;  %v2614_v60 = vld [vmem:[#allocation5 + $0x280] ss:$16 sps:$4 sm:$0xff]   ;;  %v2617_v35 = vld [vmem:[#allocation5 + $0x288] ss:$16 sps:$4 sm:$0xff]  }
 0x204   :  { %2702 = vpow2.f32 %v1092_v36  ;;  %v2622_v0 = vld [vmem:[#allocation5 + $0x2a4] ss:$16 sps:$4 sm:$0xff]   ;;  %v2625_v36 = vld [vmem:[#allocation5 + $0x2ac] ss:$16 sps:$4 sm:$0xff]  }
 0x205   :  { %2704 = vpow2.f32 %v1096_v61  ;;  %v2620_v61 = vld [vmem:[#allocation5 + $0x2a0] ss:$16 sps:$4 sm:$0xff]  }
 0x206   :  { %2706 = vpow2.f32 %v1094_v56  ;;  %v2623_v56 = vld [vmem:[#allocation5 + $0x2a8] ss:$16 sps:$4 sm:$0xff]  }
 0x207   :  { %2708 = vpow2.f32 %v1098_v63  ;;  %v2628_v63 = vld [vmem:[#allocation5 + $0x2c4] ss:$16 sps:$4 sm:$0xff]  }
 0x20a   :  { %v2695_v62 = vpop.eup %2694 }
 0x20b   :  { %v2697_v1 = vpop.eup %2696  ;;  %v1100_v2 = vadd.f32 1.0, %v2695_v62  ;;  %v2631_v62 = vld [vmem:[#allocation5 + $0x2cc] ss:$16 sps:$4 sm:$0xff]  }
 0x20c   :  { %v2699_v3 = vpop.eup %2698  ;;  %v1102_v4 = vadd.f32 1.0, %v2697_v1  ;;  %v2626_v1 = vld [vmem:[#allocation5 + $0x2c0] ss:$16 sps:$4 sm:$0xff]  }
 0x20d   :  { %v2701_v6 = vpop.eup %2700  ;;  %2710 = vrcp.f32 %v1100_v2  ;;  %v1101_v7 = vadd.f32 1.0, %v2699_v3  ;;  %v2629_v2 = vld [vmem:[#allocation5 + $0x2c8] ss:$16 sps:$4 sm:$0xff]   ;;  %v2634_v3 = vld [vmem:[#allocation5 + $0x2e4] ss:$16 sps:$4 sm:$0xff]  }
 0x20e   :  { %v2703_v8 = vpop.eup %2702  ;;  %2712 = vrcp.f32 %v1102_v4  ;;  %v1103_v5 = vadd.f32 1.0, %v2701_v6  ;;  %v2637_v4 = vld [vmem:[#allocation5 + $0x2ec] ss:$16 sps:$4 sm:$0xff]   ;;  %v2632_v6 = vld [vmem:[#allocation5 + $0x2e0] ss:$16 sps:$4 sm:$0xff]  }
 0x20f   :  { %v2705_v9 = vpop.eup %2704  ;;  %2714 = vrcp.f32 %v1101_v7  ;;  %v1104_v10 = vadd.f32 1.0, %v2703_v8  ;;  %v2635_v7 = vld [vmem:[#allocation5 + $0x2e8] ss:$16 sps:$4 sm:$0xff]   ;;  %v2640_v8 = vld [vmem:[#allocation5 + $0x304] ss:$16 sps:$4 sm:$0xff]  }
 0x210   :  { %v2707_v11 = vpop.eup %2706  ;;  %2716 = vrcp.f32 %v1103_v5  ;;  %v1106_v40 = vadd.f32 1.0, %v2705_v9  ;;  %v2643_v5 = vld [vmem:[#allocation5 + $0x30c] ss:$16 sps:$4 sm:$0xff]   ;;  %v2638_v9 = vld [vmem:[#allocation5 + $0x300] ss:$16 sps:$4 sm:$0xff]  }
 0x211   :  { %v2709_v12 = vpop.eup %2708  ;;  %2718 = vrcp.f32 %v1104_v10  ;;  %v1105_v13 = vadd.f32 1.0, %v2707_v11  ;;  %v2641_v10 = vld [vmem:[#allocation5 + $0x308] ss:$16 sps:$4 sm:$0xff]   ;;  %v2646_v11 = vld [vmem:[#allocation5 + $0x324] ss:$16 sps:$4 sm:$0xff]  }
 0x212   :  { %2720 = vrcp.f32 %v1106_v40  ;;  %v1107_v15 = vadd.f32 1.0, %v2709_v12  ;;  %v2649_v40 = vld [vmem:[#allocation5 + $0x32c] ss:$16 sps:$4 sm:$0xff]   ;;  %v2644_v12 = vld [vmem:[#allocation5 + $0x320] ss:$16 sps:$4 sm:$0xff]  }
 0x213   :  { %2722 = vrcp.f32 %v1105_v13  ;;  %v2647_v13 = vld [vmem:[#allocation5 + $0x328] ss:$16 sps:$4 sm:$0xff]  }
 0x214   :  { %2724 = vrcp.f32 %v1107_v15  ;;  %v2652_v15 = vld [vmem:[#allocation5 + $0x344] ss:$16 sps:$4 sm:$0xff]  }
 0x217   :  { %v2711_v16 = vpop.eup %2710 }
 0x218   :  { %v2713_v17 = vpop.eup %2712  ;;  %v1116_v22 = vmul.f32 %v2711_v16, %v3035_v29  ;;  %v2598_v29 = vld [vmem:[#allocation5 + $0x224] ss:$16 sps:$4 sm:$0xff]   ;;  %v2655_v16 = vld [vmem:[#allocation5 + $0x34c] ss:$16 sps:$4 sm:$0xff]  }
 0x219   :  { %v2715_v18 = vpop.eup %2714  ;;  %v1118_v25 = vmul.f32 %v2713_v17, %v3037_v30  ;;  %v2596_v30 = vld [vmem:[#allocation5 + $0x220] ss:$16 sps:$4 sm:$0xff]  }
 0x21a   :  { %v2717_v14 = vpop.eup %2716  ;;  %v1117_v28 = vmul.f32 %v2715_v18, %v3039_v33  ;;  %v2599_v33 = vld [vmem:[#allocation5 + $0x228] ss:$16 sps:$4 sm:$0xff]   ;;  %v2650_v17 = vld [vmem:[#allocation5 + $0x340] ss:$16 sps:$4 sm:$0xff]  }
 0x21b   :  { %v2719_v19 = vpop.eup %2718  ;;  %v1119_v37 = vmul.f32 %v2717_v14, %v3041_v34  ;;  %v2604_v34 = vld [vmem:[#allocation5 + $0x244] ss:$16 sps:$4 sm:$0xff]   ;;  %v2653_v18 = vld [vmem:[#allocation5 + $0x348] ss:$16 sps:$4 sm:$0xff]  }
 0x21c   :  { %v2721_v58 = vpop.eup %2720  ;;  %v1120_v39 = vmul.f32 %v2719_v19, %v1072_v43  ;;  %v2601_v43 = vld [vmem:[#allocation5 + $0x22c] ss:$16 sps:$4 sm:$0xff]   ;;  %v2658_v14 = vld [vmem:[#allocation5 + $0x364] ss:$16 sps:$4 sm:$0xff]  }
 0x21d   :  { %v2723_v24 = vpop.eup %2722  ;;  %v1122_v26 = vmul.f32 %v2721_v58, %v1074_v45  ;;  %v2607_v45 = vld [vmem:[#allocation5 + $0x24c] ss:$16 sps:$4 sm:$0xff]   ;;  %v2656_v58 = vld [vmem:[#allocation5 + $0x360] ss:$16 sps:$4 sm:$0xff]  }
 0x21e   :  { %v2725_v27 = vpop.eup %2724  ;;  %v1124_v31 = vpack.c.bf16 %v1120_v39, %v1116_v22  ;;  %v1121_v32 = vmul.f32 %v2723_v24, %v1073_v50  ;;  %v2605_v50 = vld [vmem:[#allocation5 + $0x248] ss:$16 sps:$4 sm:$0xff]   ;;  %v2661_v19 = vld [vmem:[#allocation5 + $0x36c] ss:$16 sps:$4 sm:$0xff]   ;;  %v2664_v39 = vld [vmem:[#allocation5 + $0x384] ss:$16 sps:$4 sm:$0xff]  }
 0x21f   :  { %v3051_v38 = vpack.c.bf16 %v1122_v26, %v1118_v25  ;;  %v1123_v41 = vmul.f32 %v2725_v27, %v1075_v52  ;;  %v2610_v52 = vld [vmem:[#allocation5 + $0x264] ss:$16 sps:$4 sm:$0xff]   ;;  %v2659_v22 = vld [vmem:[#allocation5 + $0x368] ss:$16 sps:$4 sm:$0xff]   ;;  %v2667_v24 = vld [vmem:[#allocation5 + $0x38c] ss:$16 sps:$4 sm:$0xff]  }
 0x220   :  { %v1125_v42 = vpack.c.bf16 %v1121_v32, %v1117_v28  ;;  %v2662_v25 = vld [vmem:[#allocation5 + $0x380] ss:$16 sps:$4 sm:$0xff]   ;;  %v2665_v26 = vld [vmem:[#allocation5 + $0x388] ss:$16 sps:$4 sm:$0xff]   ;;  %v2670_v27 = vld [vmem:[#allocation5 + $0x3a4] ss:$16 sps:$4 sm:$0xff]  }
 0x221   :  { %v1127_v48 = vpack.c.bf16 %v1123_v41, %v1119_v37  ;;  %v2673_v28 = vld [vmem:[#allocation5 + $0x3ac] ss:$16 sps:$4 sm:$0xff]   ;;  %v2671_v32 = vld [vmem:[#allocation5 + $0x3a8] ss:$16 sps:$4 sm:$0xff]   ;;  %v2676_v37 = vld [vmem:[#allocation5 + $0x3c4] ss:$16 sps:$4 sm:$0xff]  }
 0x222   :  { %1950 = vmatprep.mubr.bf16.mxu0 %v1125_v42  ;;  %2036 = vmatprep.mubr.bf16.mxu1 %v1125_v42  ;;  %v2679_v41 = vld [vmem:[#allocation5 + $0x3cc] ss:$16 sps:$4 sm:$0xff]   ;;  %v2674_v42 = vld [vmem:[#allocation5 + $0x3c0] ss:$16 sps:$4 sm:$0xff]  }
 0x223   :  { %1951 = vmatmul.mubr.bf16.vlgmr.msra.gmra.mrb[4].mxu0 %v1124_v31  ;;  %2037 = vmatmul.mubr.bf16.vlgmr.msra.gmra.mrb[4].mxu1 %v1124_v31  ;;  %v2668_v31 = vld [vmem:[#allocation5 + $0x3a0] ss:$16 sps:$4 sm:$0xff]  }
 0x224   :  { %1962 = vmatpush1.bf16.msra.mxu0 %v2590_v46  ;;  %2048 = vmatpush1.bf16.msra.mxu1 %v2593_v47  ;;  %v2677_v46 = vld [vmem:[#allocation5 + $0x3c8] ss:$16 sps:$4 sm:$0xff]   ;;  %v2682_v47 = vld [vmem:[#allocation5 + $0x3e4] ss:$16 sps:$4 sm:$0xff]  }
 0x225   :  { %1993 = vmatprep.mubr.bf16.mxu0 %v1127_v48  ;;  %2079 = vmatprep.mubr.bf16.mxu1 %v1127_v48  ;;  %v2685_v48 = vld [vmem:[#allocation5 + $0x3ec] ss:$16 sps:$4 sm:$0xff]  }
 0x226   :  { %1963 = vmatprep.subr.bf16.mxu0 %v2598_v29  ;;  %2049 = vmatprep.subr.bf16.mxu1 %v2601_v43  ;;  %v2680_v29 = vld [vmem:[#allocation5 + $0x3e0] ss:$16 sps:$4 sm:$0xff]   ;;  %v2683_v43 = vld [vmem:[#allocation5 + $0x3e8] ss:$16 sps:$4 sm:$0xff]  }
 0x228   :  { %1964 = vmatpush1.bf16.msra.mxu0 %v2596_v30  ;;  %2050 = vmatpush1.bf16.msra.mxu1 %v2599_v33  ;;  %v1256_v30 = vld [vmem:[%s3086_s5] sm:$0xf]  ;;  %s2809_s5 = smov [#allocation7]  }
 0x229   :  { %1965 = vmatprep.subr.bf16.mxu0 %v2604_v34  ;;  %2051 = vmatprep.subr.bf16.mxu1 %v2607_v45  ;;  %v1261_v33 = vrot.slane %v1256_v30, %v1050_v20  ;;  %v1269_v34 = vrot.slane %v1256_v30, %v1058_v21  ;;  %v1265_v45 = vrot.slane %v1256_v30, %v1054_v23  ;;  %s2123_s28 = sshll.u32 %s2809_s5, 4  ;;  %s2124_s28 = int_to_ptr.vmem [resolvable:$true] %s2123_s28 }
 0x22a   :  { %s2770_s29 = scalar_lea.vmem %s2124_s28, 512  ;;  %p2775_p3 = scmp.lt.s32.totalorder %s2124_s28, %s2124_s28 }
 0x22b   :  { %p2771_p2 = scmp.ne.s32.totalorder %s2124_s28, %s2770_s29  ;;  %p2776_p4 = scmp.lt.s32.totalorder %s2770_s29, %s2770_s29 }
 0x22c   :  { %1966 = vmatpush1.bf16.msra.mxu0 %v2602_v49  ;;  %2052 = vmatpush1.bf16.msra.mxu1 %v2605_v50  ;;  %v1273_v49 = vrot.slane %v1256_v30, %v1062_v44 }
 0x22d   :  { %1967 = vmatprep.subr.bf16.mxu0 %v2610_v52  ;;  %2053 = vmatprep.subr.bf16.mxu1 %v2613_v53  ;;  %p2777_p5 = por %p2776_p4, %p2775_p3 }
 0x22f   :  { %p2778_p6 = pnand %p2777_p5, %p2771_p2 }
 0x230   :  { %1968 = vmatpush1.bf16.msra.mxu0 %v2608_v54  ;;  %2054 = vmatpush1.bf16.msra.mxu1 %v2611_v55 }
 0x231   :  { %1969 = vmatprep.subr.bf16.mxu0 %v2616_v57  ;;  %2055 = vmatprep.subr.bf16.mxu1 %v2619_v59 }
 0x234   :  { %1970 = vmatpush1.bf16.msra.mxu0 %v2614_v60  ;;  %2056 = vmatpush1.bf16.msra.mxu1 %v2617_v35 }
 0x235   :  { %1971 = vmatprep.subr.bf16.mxu0 %v2622_v0  ;;  %2057 = vmatprep.subr.bf16.mxu1 %v2625_v36 }
 0x238   :  { %1972 = vmatpush1.bf16.msra.mxu0 %v2620_v61  ;;  %2058 = vmatpush1.bf16.msra.mxu1 %v2623_v56 }
 0x239   :  { %1973 = vmatprep.subr.bf16.mxu0 %v2628_v63  ;;  %2059 = vmatprep.subr.bf16.mxu1 %v2631_v62 }
 0x23c   :  { %1974 = vmatpush1.bf16.msra.mxu0 %v2626_v1  ;;  %2060 = vmatpush1.bf16.msra.mxu1 %v2629_v2 }
 0x23d   :  { %1975 = vmatprep.subr.bf16.mxu0 %v2634_v3  ;;  %2061 = vmatprep.subr.bf16.mxu1 %v2637_v4 }
 0x240   :  { %1976 = vmatpush1.bf16.msra.mxu0 %v2632_v6  ;;  %2062 = vmatpush1.bf16.msra.mxu1 %v2635_v7 }
 0x241   :  { %1977 = vmatprep.subr.bf16.mxu0 %v2640_v8  ;;  %2063 = vmatprep.subr.bf16.mxu1 %v2643_v5 }
 0x244   :  { %1978 = vmatpush1.bf16.msra.mxu0 %v2638_v9  ;;  %2064 = vmatpush1.bf16.msra.mxu1 %v2641_v10 }
 0x245   :  { %1979 = vmatprep.subr.bf16.mxu0 %v2646_v11  ;;  %2065 = vmatprep.subr.bf16.mxu1 %v2649_v40 }
 0x248   :  { %1980 = vmatpush1.bf16.msra.mxu0 %v2644_v12  ;;  %2066 = vmatpush1.bf16.msra.mxu1 %v2647_v13 }
 0x249   :  { %1981 = vmatprep.subr.bf16.mxu0 %v2652_v15  ;;  %2067 = vmatprep.subr.bf16.mxu1 %v2655_v16 }
 0x24c   :  { %1982 = vmatpush1.bf16.msra.mxu0 %v2650_v17  ;;  %2068 = vmatpush1.bf16.msra.mxu1 %v2653_v18 }
 0x24d   :  { %1983 = vmatprep.subr.bf16.mxu0 %v2658_v14  ;;  %2069 = vmatprep.subr.bf16.mxu1 %v2661_v19 }
 0x250   :  { %1984 = vmatpush1.bf16.msra.mxu0 %v2656_v58  ;;  %2070 = vmatpush1.bf16.msra.mxu1 %v2659_v22 }
 0x251   :  { %1985 = vmatprep.subr.bf16.mxu0 %v2664_v39  ;;  %2071 = vmatprep.subr.bf16.mxu1 %v2667_v24 }
 0x254   :  { %1986 = vmatpush1.bf16.msra.mxu0 %v2662_v25  ;;  %2072 = vmatpush1.bf16.msra.mxu1 %v2665_v26 }
 0x255   :  { %1987 = vmatprep.subr.bf16.mxu0 %v2670_v27  ;;  %2073 = vmatprep.subr.bf16.mxu1 %v2673_v28 }
 0x258   :  { %1988 = vmatpush1.bf16.msra.mxu0 %v2668_v31  ;;  %2074 = vmatpush1.bf16.msra.mxu1 %v2671_v32 }
 0x259   :  { %1989 = vmatprep.subr.bf16.mxu0 %v2676_v37  ;;  %2075 = vmatprep.subr.bf16.mxu1 %v2679_v41 }
 0x25c   :  { %1990 = vmatpush1.bf16.msra.mxu0 %v2674_v42  ;;  %2076 = vmatpush1.bf16.msra.mxu1 %v2677_v46 }
 0x25d   :  { %1991 = vmatprep.subr.bf16.mxu0 %v2682_v47  ;;  %2077 = vmatprep.subr.bf16.mxu1 %v2685_v48 }
 0x260   :  { %1992 = vmatpush1.bf16.msra.mxu0 %v2680_v29  ;;  %2078 = vmatpush1.bf16.msra.mxu1 %v2683_v43 }
 0x263   :  { %1994 = vmatmul.mubr.bf16.vlgmr.msra.gmra.mrb[4].mxu0 %v3051_v38  ;;  %2080 = vmatmul.mubr.bf16.vlgmr.msra.gmra.mrb[4].mxu1 %v3051_v38 }
 0x336   :  { %v1995_v50 = vpop.f32.mrb[4].mxu0  ;;  %v2081_v52 = vpop.f32.mrb[4].mxu1 }
 0x337   :  { %v2353_v53 = vadd.f32 %v1995_v50, %v1261_v33  ;;  %v2357_v38 = vadd.f32 %v2081_v52, %v1269_v34  ;;  %v1997_v54 = vpop.f32.mrb[5].mxu0  ;;  %v2083_v55 = vpop.f32.mrb[5].mxu1 }
 0x338   :  { %v2354_v57 = vadd.f32 %v1997_v54, %v1265_v45  ;;  %v2358_v59 = vadd.f32 %v2083_v55, %v1273_v49  ;;  %v1999_v60 = vpop.f32.mrb[6].mxu0  ;;  %v2085_v35 = vpop.f32.mrb[6].mxu1 }
 0x339   :  { %v2355_v20 = vadd.f32 %v1999_v60, %v1261_v33  ;;  %v2359_v0 = vadd.f32 %v2085_v35, %v1269_v34  ;;  %v2001_v36 = vpop.f32.mrb[7].mxu0  ;;  %v2087_v21 = vpop.f32.mrb[7].mxu1 }
 0x33a   :  { %v2349_v23 = vpack.c.bf16 %v2354_v57, %v2353_v53  ;;  %v2350_v61 = vpack.c.bf16 %v2358_v59, %v2357_v38  ;;  %v2356_v51 = vadd.f32 %v2001_v36, %v1265_v45  ;;  %v2360_v44 = vadd.f32 %v2087_v21, %v1273_v49 }
 0x33c   :  { %2114 = vst [vmem:[#allocation7] sm:$0xff] %v2349_v23  ;;  %2115 = vst [vmem:[#allocation7 + $0x8] sm:$0xff] %v2350_v61  ;;  %v2351_v56 = vpack.c.bf16 %v2356_v51, %v2355_v20  ;;  %v2352_v63 = vpack.c.bf16 %v2360_v44, %v2359_v0 }
 0x33e   :  { %2116 = vst [vmem:[#allocation7 + $0x10] sm:$0xff] %v2351_v56  ;;  %2117 = vst [vmem:[#allocation7 + $0x18] sm:$0xff] %v2352_v63 }
 0x33f   :  { %2781 = shalt.err (!%p2778_p6)
}
 0x340   :  { %s2782_s10 = scalar_lea.hbm %s3087_s6, 512 }
 0x341   :  { %p2783_p7 = scmp.ne.s32.totalorder %s3087_s6, %s2782_s10  ;;  %p2786_p8 = scmp.lt.u32.totalorder %s2782_s10, %s3087_s6 }
 0x343   :  { %p2788_p9 = pnand %p2786_p8, %p2783_p7 }
 0x345   :  { %2791 = shalt.err (!%p2788_p9)
}
 0x346   :  { %2129 = dma.vmem_to_hbm [thread:$0]  %s2124_s28, 512, %s3087_s6, [#allocation4], %s2799_s7, %s2799_s7, %s2800_s8  }
 0x347   :  { %2796 = dma.done.wait [#allocation4], 512  }
 0x348   :  { %2797 = vsyncadd [#allocation4], 4294966784 }
 0x349   :  { %2133 = vsyncpa [#allocation3], 1 }
 0x34a   :  { %2134 = vsyncpa [#allocation6], 1 }
 0x34b   :  { %2135 = vsyncpa [#allocation4], 1 }

</bundles_post_ra>
